<compile_context>
chip_gen: v6e
topology: v6e:2x2x1
jax: 0.10.0
libtpu: 0.0.40
codegen_flags: <defaults>
</compile_context>

<pallas_src>
import functools

import jax
import jax.numpy as jnp
from jax import lax
from jax.experimental import pallas as pl
from jax.experimental.pallas import tpu as pltpu


def _round_up(x, m):
    return (x + m - 1) // m * m


def _spa_conv_kernel(x_ref, w_ref, o_ref, slab_ref, *, img_w, out_len, c_pad,
                     compute_dtype):
    """One batch block per grid step.

    x_ref    : (Nb, C_pad, H*W)      VMEM, input dtype (flat image, lane-dense)
    w_ref    : (CO_pad, 9*C_pad)     VMEM, compute dtype (resident weight)
    o_ref    : (Nb, CO_pad, M_pad)   VMEM, output dtype (lane/sublane dense)
    slab_ref : (Nb, 9*C_pad, M_pad)  VMEM scratch, compute dtype (im2col slab)
    """
    nb = x_ref.shape[0]

    # One-time: zero the slab so its lane-padding tail ([out_len:M_pad]) only
    # ever contributes zeros to the (cropped) padded output columns.  The valid
    # region [:out_len] is fully overwritten every grid step below.
    @pl.when(pl.program_id(0) == 0)
    def _():
        slab_ref[...] = jnp.zeros_like(slab_ref)

    # Cast the whole input block to the MXU operand dtype ONCE (not per tap).
    xb = x_ref[...].astype(compute_dtype)                     # (Nb, C_pad, HW)

    # Build the im2col slab with 9 vectorized slice-stores: tap (kh, kw) is just
    # a lane shift of the flat image.  Row order (tap, c) matches w_ref columns.
    for t in range(9):
        kh, kw = divmod(t, 3)
        off = kh * img_w + kw
        slab_ref[:, t * c_pad:(t + 1) * c_pad, :out_len] = xb[:, :, off:off + out_len]

    w = w_ref[...]                                            # resident, hoisted

    # One fused-K matmul per image; fori_loop bounds live ranges so the batch
    # block can be raised well past 8 without vreg/VMEM blow-up.
    def body(b, carry):
        acc = jnp.dot(w, slab_ref[b], preferred_element_type=jnp.float32)
        o_ref[b] = acc.astype(o_ref.dtype)
        return carry

    lax.fori_loop(0, nb, body, 0, unroll=(nb <= 8))


def _tpu_generation_config():
    """Best-effort (vmem_budget_bytes, tensorcores_per_chip) for the local TPU."""
    budget, cores = 24 << 20, 1            # conservative default
    try:
        kind = jax.devices()[0].device_kind.lower()
    except Exception:
        return budget, cores
    if "v7" in kind:                       # v7x: 64 MiB VMEM per TC, 2 TCs/chip
        budget, cores = 24 << 20, 2
    elif "v6" in kind or "v5" in kind:     # v5e/v6e: 128 MiB VMEM, 1 TC/chip
        budget, cores = 48 << 20, 1
    return budget, cores


def spa_module_in_forward(x, weight, *, compute_dtype=jnp.bfloat16):
    """x: (N, Cin, D, H, W), weight: (Cout, Cin, k, 3, 3), with D == k.

    Returns (N, Cout, H-2, W-2), matching SPAModuleIN.forward (bias=False).
    MXU operands in `compute_dtype`, f32 accumulation.
    """
    N, Cin, D, H, W = x.shape
    CO, Cin_w, k, kh3, kw3 = weight.shape
    assert Cin == Cin_w and D == k and kh3 == 3 and kw3 == 3, "shape mismatch"
    assert H >= 3 and W >= 3

    C = Cin * D
    C_pad = _round_up(C, 8)                # sublane-aligned slab chunks
    CO_pad = _round_up(CO, 8)              # sublane-dense output block
    HW = H * W
    Hout, Wout = H - 2, W - 2
    out_len = Hout * W - 2                 # last valid flat output index + 1
    M_full = Hout * W                      # flat length needed for the reshape
    M_pad = _round_up(M_full, 128)         # lane-dense output block

    # Pure reshape (+ cheap zero channel pad) -- no transpose of the input.
    x_flat = x.reshape(N, C, HW)
    if C_pad != C:
        x_flat = jnp.pad(x_flat, ((0, 0), (0, C_pad - C), (0, 0)))

    # Weight -> (CO_pad, 9*C_pad), column = (kh*3 + kw) * C_pad + c.  Tiny.
    w_mat = weight.reshape(CO, C, 3, 3).transpose(0, 2, 3, 1)   # (CO, 3, 3, C)
    if C_pad != C:
        w_mat = jnp.pad(w_mat, ((0, 0), (0, 0), (0, 0), (0, C_pad - C)))
    w_mat = w_mat.reshape(CO, 9 * C_pad)
    if CO_pad != CO:
        w_mat = jnp.pad(w_mat, ((0, CO_pad - CO), (0, 0)))
    w_mat = w_mat.astype(compute_dtype)

    # --- batch-block sizing against a generation-aware VMEM budget -----------
    vmem_budget, n_cores = _tpu_generation_config()
    in_sz = jnp.dtype(x.dtype).itemsize
    cd_sz = jnp.dtype(compute_dtype).itemsize
    out_sz = jnp.dtype(x.dtype).itemsize

    def block_vmem_bytes(nb):
        in_blk = nb * C_pad * HW * in_sz           # input block (double-buffered)
        cast_tmp = nb * C_pad * HW * cd_sz         # xb cast intermediate
        slab = nb * 9 * C_pad * M_pad * cd_sz      # persistent im2col scratch
        out_blk = nb * CO_pad * M_pad * out_sz     # output block (double-buffered)
        w_blk = CO_pad * 9 * C_pad * cd_sz
        acc_tmp = CO_pad * M_pad * 4
        return 2 * in_blk + cast_tmp + slab + 2 * out_blk + 2 * w_blk + acc_tmp

    max_nb = 64
    cap = max_nb
    if n_cores >= 2 and N >= 2:
        cap = min(cap, N // 2)                     # >= 2 parallel blocks, v7x only
    nb = 1
    for d in range(1, N + 1):                      # largest divisor of N in budget
        if N % d == 0 and d <= cap and block_vmem_bytes(d) <= vmem_budget:
            nb = d
    # TODO(synk): for prime/awkward N this falls back to nb=1 (correct but
    # step-overhead bound); padding N to a multiple of a good nb would help.

    vmem_limit = min(vmem_budget + (16 << 20), 112 << 20)

    kernel = functools.partial(_spa_conv_kernel, img_w=W, out_len=out_len,
                               c_pad=C_pad, compute_dtype=compute_dtype)

    out_flat = pl.pallas_call(
        kernel,
        out_shape=jax.ShapeDtypeStruct((N, CO_pad, M_pad), x.dtype),
        grid_spec=pltpu.PrefetchScalarGridSpec(
            num_scalar_prefetch=0,
            grid=(N // nb,),
            in_specs=[
                pl.BlockSpec((nb, C_pad, HW), lambda n: (n, 0, 0)),
                pl.BlockSpec((CO_pad, 9 * C_pad), lambda n: (0, 0)),  # resident
            ],
            out_specs=pl.BlockSpec((nb, CO_pad, M_pad), lambda n: (n, 0, 0)),
            scratch_shapes=[pltpu.VMEM((nb, 9 * C_pad, M_pad), compute_dtype)],
        ),
        compiler_params=pltpu.CompilerParams(
            dimension_semantics=("parallel",),
            vmem_limit_bytes=vmem_limit,
        ),
    )(x_flat, w_mat)

    # (N, CO_pad, M_pad) -> (N, CO, Hout, Wout): crop channel/lane padding,
    # reshape with stride W (free), crop the last 2 columns.  Only the small
    # output is touched; no transpose, no pad.
    return out_flat[:, :CO, :M_full].reshape(N, CO, Hout, W)[:, :, :, :Wout]


def _reference(x, weight):
    """Pure-JAX reference: conv3d with full-depth kernel == conv2d on folded channels."""
    N, Cin, D, H, W = x.shape
    CO = weight.shape[0]
    C = Cin * D
    x2 = x.reshape(N, C, H, W).astype(jnp.float32)
    w2 = weight.reshape(CO, C, 3, 3).astype(jnp.float32)
    return lax.conv_general_dilated(
        x2, w2, window_strides=(1, 1), padding="VALID",
        dimension_numbers=("NCHW", "OIHW", "NCHW"),
    )


if __name__ == "__main__":
    # Small deterministic setup (module __init__: Conv3d(Cin, Cout, (k,3,3), bias=False)).
    N, Cin, Cout, k, H, W = 2, 1, 4, 8, 16, 16   # depth D must equal k for squeeze(2)

    key = jax.random.PRNGKey(0)
    kx, kw_key = jax.random.split(key)
    x = jax.random.normal(kx, (N, Cin, k, H, W), dtype=jnp.float32)
    fan_in = Cin * k * 3 * 3
    weight = jax.random.uniform(
        kw_key, (Cout, Cin, k, 3, 3), dtype=jnp.float32,
        minval=-1.0, maxval=1.0) / (fan_in ** 0.5)

    ref = jax.block_until_ready(_reference(x, weight))

    # 1) Full-f32 path: matches the conv reference tightly.
    out_f32 = jax.block_until_ready(
        spa_module_in_forward(x, weight, compute_dtype=jnp.float32))
    assert out_f32.shape == (N, Cout, H - 2, W - 2), out_f32.shape
    assert jnp.allclose(out_f32, ref, atol=1e-3, rtol=1e-3), \
        float(jnp.max(jnp.abs(out_f32 - ref)))

    # 2) Default optimized path: bf16 MXU operands, f32 accumulation.
    out = jax.block_until_ready(spa_module_in_forward(x, weight))
    assert out.shape == (N, Cout, H - 2, W - 2), out.shape
    ref_bf16 = jax.block_until_ready(_reference(
        x.astype(jnp.bfloat16).astype(jnp.float32),
        weight.astype(jnp.bfloat16).astype(jnp.float32)))
    assert jnp.allclose(out, ref_bf16, atol=5e-3, rtol=5e-3), \
        float(jnp.max(jnp.abs(out - ref_bf16)))
    assert jnp.allclose(out, ref, atol=1e-1, rtol=1e-1), \
        float(jnp.max(jnp.abs(out - ref)))

    print("KERNEL_OK")
</pallas_src>

<mosaic_0001>
module attributes {stable_mosaic.version = 11 : i64} {
  func.func @_spa_conv_kernel(%arg0: i32, %arg1: memref<2x8x256xf32, #tpu.memory_space<vmem>>, %arg2: memref<8x72xf32, #tpu.memory_space<vmem>>, %arg3: memref<2x8x256xf32, #tpu.memory_space<vmem>>, %arg4: memref<2x72x256xf32, #tpu.memory_space<vmem>>) attributes {dimension_semantics = [#tpu.dimension_semantics<parallel>], iteration_bounds = array<i64: 1>, scalar_prefetch = 0 : i64, scratch_operands = 1 : i64, tpu.core_type = #tpu.core_type<tc>, window_params = [{transform_indices = @transform_0, window_bounds = array<i64: 2, 8, 256>}, {pipeline_mode = #tpu.pipeline_mode<synchronous>, transform_indices = @transform_1, window_bounds = array<i64: 8, 72>}, {transform_indices = @transform_2, window_bounds = array<i64: 2, 8, 256>}]} {
    %c0_i32 = arith.constant 0 : i32
    %0 = arith.cmpi eq, %arg0, %c0_i32 : i32
    %1 = arith.extui %0 : i1 to i32
    %c0_i32_0 = arith.constant 0 : i32
    %2 = arith.cmpi ne, %1, %c0_i32_0 : i32
    scf.if %2 {
      %cst_34 = arith.constant 0.000000e+00 : f32
      %39 = vector.broadcast %cst_34 : f32 to vector<2x72x256xf32>
      %c0_35 = arith.constant 0 : index
      %c0_36 = arith.constant 0 : index
      %c0_37 = arith.constant 0 : index
      %40 = vector.load %arg4[%c0_35, %c0_36, %c0_37] : memref<2x72x256xf32, #tpu.memory_space<vmem>>, vector<2x72x256xf32>
      tpu.vector_store %arg4[%c0_35, %c0_36, %c0_37], %39 {strides = array<i32>} : memref<2x72x256xf32, #tpu.memory_space<vmem>>, vector<2x72x256xf32>,
    } else {
    }
    %c0 = arith.constant 0 : index
    %c0_1 = arith.constant 0 : index
    %c0_2 = arith.constant 0 : index
    %3 = vector.load %arg1[%c0, %c0_1, %c0_2] : memref<2x8x256xf32, #tpu.memory_space<vmem>>, vector<2x8x256xf32>
    %4 = vector.extract_strided_slice %3 {offsets = [0, 0, 0], sizes = [2, 8, 222], strides = [1, 1, 1]} : vector<2x8x256xf32> to vector<2x8x222xf32>
    %c0_3 = arith.constant 0 : index
    %c0_4 = arith.constant 0 : index
    %c0_5 = arith.constant 0 : index
    %5 = vector.load %arg4[%c0_3, %c0_4, %c0_5] : memref<2x72x256xf32, #tpu.memory_space<vmem>>, vector<2x8x222xf32>
    tpu.vector_store %arg4[%c0_3, %c0_4, %c0_5], %4 {strides = array<i32>} : memref<2x72x256xf32, #tpu.memory_space<vmem>>, vector<2x8x222xf32>,
    %6 = vector.extract_strided_slice %3 {offsets = [0, 0, 1], sizes = [2, 8, 222], strides = [1, 1, 1]} : vector<2x8x256xf32> to vector<2x8x222xf32>
    %c0_6 = arith.constant 0 : index
    %c8 = arith.constant 8 : index
    %c0_7 = arith.constant 0 : index
    %7 = vector.load %arg4[%c0_6, %c8, %c0_7] : memref<2x72x256xf32, #tpu.memory_space<vmem>>, vector<2x8x222xf32>
    tpu.vector_store %arg4[%c0_6, %c8, %c0_7], %6 {strides = array<i32>} : memref<2x72x256xf32, #tpu.memory_space<vmem>>, vector<2x8x222xf32>,
    %8 = vector.extract_strided_slice %3 {offsets = [0, 0, 2], sizes = [2, 8, 222], strides = [1, 1, 1]} : vector<2x8x256xf32> to vector<2x8x222xf32>
    %c0_8 = arith.constant 0 : index
    %c16 = arith.constant 16 : index
    %c0_9 = arith.constant 0 : index
    %9 = vector.load %arg4[%c0_8, %c16, %c0_9] : memref<2x72x256xf32, #tpu.memory_space<vmem>>, vector<2x8x222xf32>
    tpu.vector_store %arg4[%c0_8, %c16, %c0_9], %8 {strides = array<i32>} : memref<2x72x256xf32, #tpu.memory_space<vmem>>, vector<2x8x222xf32>,
    %10 = vector.extract_strided_slice %3 {offsets = [0, 0, 16], sizes = [2, 8, 222], strides = [1, 1, 1]} : vector<2x8x256xf32> to vector<2x8x222xf32>
    %c0_10 = arith.constant 0 : index
    %c24 = arith.constant 24 : index
    %c0_11 = arith.constant 0 : index
    %11 = vector.load %arg4[%c0_10, %c24, %c0_11] : memref<2x72x256xf32, #tpu.memory_space<vmem>>, vector<2x8x222xf32>
    tpu.vector_store %arg4[%c0_10, %c24, %c0_11], %10 {strides = array<i32>} : memref<2x72x256xf32, #tpu.memory_space<vmem>>, vector<2x8x222xf32>,
    %12 = vector.extract_strided_slice %3 {offsets = [0, 0, 17], sizes = [2, 8, 222], strides = [1, 1, 1]} : vector<2x8x256xf32> to vector<2x8x222xf32>
    %c0_12 = arith.constant 0 : index
    %c32 = arith.constant 32 : index
    %c0_13 = arith.constant 0 : index
    %13 = vector.load %arg4[%c0_12, %c32, %c0_13] : memref<2x72x256xf32, #tpu.memory_space<vmem>>, vector<2x8x222xf32>
    tpu.vector_store %arg4[%c0_12, %c32, %c0_13], %12 {strides = array<i32>} : memref<2x72x256xf32, #tpu.memory_space<vmem>>, vector<2x8x222xf32>,
    %14 = vector.extract_strided_slice %3 {offsets = [0, 0, 18], sizes = [2, 8, 222], strides = [1, 1, 1]} : vector<2x8x256xf32> to vector<2x8x222xf32>
    %c0_14 = arith.constant 0 : index
    %c40 = arith.constant 40 : index
    %c0_15 = arith.constant 0 : index
    %15 = vector.load %arg4[%c0_14, %c40, %c0_15] : memref<2x72x256xf32, #tpu.memory_space<vmem>>, vector<2x8x222xf32>
    tpu.vector_store %arg4[%c0_14, %c40, %c0_15], %14 {strides = array<i32>} : memref<2x72x256xf32, #tpu.memory_space<vmem>>, vector<2x8x222xf32>,
    %16 = vector.extract_strided_slice %3 {offsets = [0, 0, 32], sizes = [2, 8, 222], strides = [1, 1, 1]} : vector<2x8x256xf32> to vector<2x8x222xf32>
    %c0_16 = arith.constant 0 : index
    %c48 = arith.constant 48 : index
    %c0_17 = arith.constant 0 : index
    %17 = vector.load %arg4[%c0_16, %c48, %c0_17] : memref<2x72x256xf32, #tpu.memory_space<vmem>>, vector<2x8x222xf32>
    tpu.vector_store %arg4[%c0_16, %c48, %c0_17], %16 {strides = array<i32>} : memref<2x72x256xf32, #tpu.memory_space<vmem>>, vector<2x8x222xf32>,
    %18 = vector.extract_strided_slice %3 {offsets = [0, 0, 33], sizes = [2, 8, 222], strides = [1, 1, 1]} : vector<2x8x256xf32> to vector<2x8x222xf32>
    %c0_18 = arith.constant 0 : index
    %c56 = arith.constant 56 : index
    %c0_19 = arith.constant 0 : index
    %19 = vector.load %arg4[%c0_18, %c56, %c0_19] : memref<2x72x256xf32, #tpu.memory_space<vmem>>, vector<2x8x222xf32>
    tpu.vector_store %arg4[%c0_18, %c56, %c0_19], %18 {strides = array<i32>} : memref<2x72x256xf32, #tpu.memory_space<vmem>>, vector<2x8x222xf32>,
    %20 = vector.extract_strided_slice %3 {offsets = [0, 0, 34], sizes = [2, 8, 222], strides = [1, 1, 1]} : vector<2x8x256xf32> to vector<2x8x222xf32>
    %c0_20 = arith.constant 0 : index
    %c64 = arith.constant 64 : index
    %c0_21 = arith.constant 0 : index
    %21 = vector.load %arg4[%c0_20, %c64, %c0_21] : memref<2x72x256xf32, #tpu.memory_space<vmem>>, vector<2x8x222xf32>
    tpu.vector_store %arg4[%c0_20, %c64, %c0_21], %20 {strides = array<i32>} : memref<2x72x256xf32, #tpu.memory_space<vmem>>, vector<2x8x222xf32>,
    %c0_22 = arith.constant 0 : index
    %c0_23 = arith.constant 0 : index
    %22 = vector.load %arg2[%c0_22, %c0_23] : memref<8x72xf32, #tpu.memory_space<vmem>>, vector<8x72xf32>
    %c0_i32_24 = arith.constant 0 : i32
    %23 = arith.index_cast %c0_i32_24 : i32 to index
    %c0_25 = arith.constant 0 : index
    %c0_26 = arith.constant 0 : index
    %24 = vector.load %arg4[%23, %c0_25, %c0_26] : memref<2x72x256xf32, #tpu.memory_space<vmem>>, vector<1x72x256xf32>
    %25 = vector.shape_cast %24 : vector<1x72x256xf32> to vector<72x256xf32>
    %cst = arith.constant dense<0.000000e+00> : vector<8x256xf32>
    %26 = tpu.matmul %22, %25, %cst {dimension_numbers = #tpu.dot_dimension_numbers<[1], [0], [0], [1], [0, 0, 1, 1], [], []>} : vector<8x72xf32>, vector<72x256xf32>, vector<8x256xf32> -> vector<8x256xf32>
    %27 = arith.index_cast %c0_i32_24 : i32 to index
    %c0_27 = arith.constant 0 : index
    %c0_28 = arith.constant 0 : index
    %28 = vector.load %arg3[%27, %c0_27, %c0_28] : memref<2x8x256xf32, #tpu.memory_space<vmem>>, vector<1x8x256xf32>
    %29 = vector.shape_cast %28 : vector<1x8x256xf32> to vector<8x256xf32>
    %30 = vector.shape_cast %26 : vector<8x256xf32> to vector<1x8x256xf32>
    tpu.vector_store %arg3[%27, %c0_27, %c0_28], %30 {strides = array<i32>} : memref<2x8x256xf32, #tpu.memory_space<vmem>>, vector<1x8x256xf32>,
    %c1_i32 = arith.constant 1 : i32
    %31 = arith.index_cast %c1_i32 : i32 to index
    %c0_29 = arith.constant 0 : index
    %c0_30 = arith.constant 0 : index
    %32 = vector.load %arg4[%31, %c0_29, %c0_30] : memref<2x72x256xf32, #tpu.memory_space<vmem>>, vector<1x72x256xf32>
    %33 = vector.shape_cast %32 : vector<1x72x256xf32> to vector<72x256xf32>
    %cst_31 = arith.constant dense<0.000000e+00> : vector<8x256xf32>
    %34 = tpu.matmul %22, %33, %cst_31 {dimension_numbers = #tpu.dot_dimension_numbers<[1], [0], [0], [1], [0, 0, 1, 1], [], []>} : vector<8x72xf32>, vector<72x256xf32>, vector<8x256xf32> -> vector<8x256xf32>
    %35 = arith.index_cast %c1_i32 : i32 to index
    %c0_32 = arith.constant 0 : index
    %c0_33 = arith.constant 0 : index
    %36 = vector.load %arg3[%35, %c0_32, %c0_33] : memref<2x8x256xf32, #tpu.memory_space<vmem>>, vector<1x8x256xf32>
    %37 = vector.shape_cast %36 : vector<1x8x256xf32> to vector<8x256xf32>
    %38 = vector.shape_cast %34 : vector<8x256xf32> to vector<1x8x256xf32>
    tpu.vector_store %arg3[%35, %c0_32, %c0_33], %38 {strides = array<i32>} : memref<2x8x256xf32, #tpu.memory_space<vmem>>, vector<1x8x256xf32>,
    %c2_i32 = arith.constant 2 : i32
    return
  }
  func.func @transform_0(%arg0: i32) -> (i32, i32, i32) {
    %c0_i32 = arith.constant 0 : i32
    %c0_i32_0 = arith.constant 0 : i32
    %c0_i32_1 = arith.constant 0 : i32
    return %arg0, %c0_i32, %c0_i32_0 : i32, i32, i32
  }
  func.func @transform_1(%arg0: i32) -> (i32, i32) {
    %c0_i32 = arith.constant 0 : i32
    %c0_i32_0 = arith.constant 0 : i32
    %c0_i32_1 = arith.constant 0 : i32
    return %c0_i32, %c0_i32_0 : i32, i32
  }
  func.func @transform_2(%arg0: i32) -> (i32, i32, i32) {
    %c0_i32 = arith.constant 0 : i32
    %c0_i32_0 = arith.constant 0 : i32
    %c0_i32_1 = arith.constant 0 : i32
    return %arg0, %c0_i32, %c0_i32_0 : i32, i32, i32
  }
}

</mosaic_0001>

<bundles_post_ra>
// kernel: tpu_custom_call.1
= control target key start
LH: loop header
LB: loop body
LE: loop exit
PB: predicated region body
PF: predicated region fallthrough
CT: control target
= control target key end

     0   :  { %7 = vsyncpa [#allocation4], 0  ;;  %s617_s0 = inlined_call_operand.hbm [shape: f32[2,8,256], index: 0, kind: input, shape index: {}]   ;;  %s618_s1 = inlined_call_operand.hbm [shape: f32[8,72], index: 1, kind: input, shape index: {}]   ;;  %s619_s2 = inlined_call_operand.hbm [shape: f32[2,8,256], index: 2, kind: output, shape index: {}]  }
   0x1   :  { %8 = vsyncpa [#allocation7], 0 }
   0x2   :  { %9 = vsyncpa [#allocation5], 0  ;;  %s531_s9 = smov [#allocation3]  }
   0x3   :  { %s15_s10 = sshll.u32 %s531_s9, 4  ;;  %s16_s10 = int_to_ptr.vmem [resolvable:$true] %s15_s10 }
   0x4   :  { %s473_s11 = scalar_lea.vmem %s16_s10, 512  ;;  %p478_p1 = scmp.lt.s32.totalorder %s16_s10, %s16_s10 }
   0x5   :  { %p474_p0 = scmp.ne.s32.totalorder %s16_s10, %s473_s11  ;;  %p479_p2 = scmp.lt.s32.totalorder %s473_s11, %s473_s11 }
   0x7   :  { %p480_p3 = por %p479_p2, %p478_p1 }
   0x9   :  { %p481_p4 = pnand %p480_p3, %p474_p0 }
   0xb   :  { %484 = shalt.err (!%p481_p4)
}
   0xc   :  { %s532_s12 = smov 256   ;;  %s533_s13 = smov 16  }
   0xd   :  { %21 = dma.hbm_to_vmem [thread:$0]  %s617_s0, 512, %s16_s10, [#allocation4], %s532_s12, %s532_s12, %s533_s13  }
   0xe   :  { %s534_s16 = smov [#allocation6]  }
   0xf   :  { %s28_s17 = sshll.u32 %s534_s16, 4  ;;  %s29_s17 = int_to_ptr.vmem [resolvable:$true] %s28_s17 }
  0x10   :  { %s493_s18 = scalar_lea.vmem %s29_s17, 128  ;;  %p498_p6 = scmp.lt.s32.totalorder %s29_s17, %s29_s17 }
  0x11   :  { %p494_p5 = scmp.ne.s32.totalorder %s29_s17, %s493_s18  ;;  %p499_p7 = scmp.lt.s32.totalorder %s493_s18, %s493_s18 }
  0x13   :  { %p500_p8 = por %p499_p7, %p498_p6 }
  0x15   :  { %p501_p9 = pnand %p500_p8, %p494_p5 }
  0x17   :  { %504 = shalt.err (!%p501_p9)
}
  0x18   :  { %31 = dma.hbm_to_vmem [thread:$0]  %s618_s1, 128, %s29_s17, [#allocation7]  }
  0x19   :  { %525 = dma.done.wait [#allocation4], 512  }
  0x1a   :  { %526 = vsyncadd [#allocation4], 4294966784 }
  0x1b   :  { %527 = dma.done.wait [#allocation7], 128  }
  0x1c   :  { %528 = vsyncadd [#allocation7], 4294967168  ;;  %v535_v0 = vmov 0.0   ;;  %v569_v1 = vld [vmem:[#allocation3 + $0x10] sm:$0xff]  ;;  %v571_v2 = vld [vmem:[#allocation3] sm:$0xff]  ;;  %vm83_vm0 = vcmask 769024  }
  0x1d   :  { %77 = vst [vmem:[#allocation2 + $0x118] sm:$0xff] %v535_v0  ;;  %43 = vst [vmem:[#allocation2 + $0x8] sm:$0xff] %v535_v0  ;;  %329 = vmatprep.mubr.f32.mxu0 %v535_v0  ;;  %421 = vmatprep.mubr.f32.mxu1 %v535_v0  ;;  %v81_v3 = vld [vmem:[#allocation3 + $0x18] sm:$0xff]  ;;  %s536_s0 = smov 94   ;;  %v79_v4 = vld [vmem:[#allocation3 + $0x8] sm:$0xff]  ;;  %s537_s1 = smov 95  }
  0x1e   :  { %45 = vst [vmem:[#allocation2 + $0x18] sm:$0xff] %v535_v0  ;;  %47 = vst [vmem:[#allocation2 + $0x28] sm:$0xff] %v535_v0  ;;  %228 = vrot.lane.b32.xlu1 %v569_v1, %s536_s0  ;;  %224 = vrot.lane.b32.xlu0 %v571_v2, %s536_s0  ;;  %s538_s21 = smov 96   ;;  %s539_s22 = smov 110   ;;  %vm213_vm1 = vcmask 777216   ;;  %vm194_vm2 = vcmask 785408  }
  0x1f   :  { %49 = vst [vmem:[#allocation2 + $0x38] sm:$0xff] %v535_v0  ;;  %51 = vst [vmem:[#allocation2 + $0x48] sm:$0xff] %v535_v0  ;;  %s540_s23 = smov 111   ;;  %s541_s24 = smov 112   ;;  %vm175_vm3 = vcmask 900096   ;;  %vm156_vm4 = vcmask 908288  }
  0x20   :  { %53 = vst [vmem:[#allocation2 + $0x58] sm:$0xff] %v535_v0  ;;  %55 = vst [vmem:[#allocation2 + $0x68] sm:$0xff] %v535_v0  ;;  %s542_s25 = smov 126   ;;  %s543_s26 = smov 127   ;;  %vm137_vm5 = vcmask 916480   ;;  %vm118_vm6 = vcmask 1031168  }
  0x21   :  { %57 = vst [vmem:[#allocation2 + $0x78] sm:$0xff] %v535_v0  ;;  %59 = vst [vmem:[#allocation2 + $0x88] sm:$0xff] %v535_v0  ;;  %vm99_vm7 = vcmask 1039360   ;;  %vm261_vm8 = vcmask 588800   ;;  %s544_s27 = smov [#allocation8]  }
  0x22   :  { %61 = vst [vmem:[#allocation2 + $0x98] sm:$0xff] %v535_v0  ;;  %63 = vst [vmem:[#allocation2 + $0xa8] sm:$0xff] %v535_v0  ;;  %230 = vrot.lane.b32.xlu1 %v81_v3, %s536_s0  ;;  %226 = vrot.lane.b32.xlu0 %v79_v4, %s536_s0  ;;  %s436_s28 = sshll.u32 %s544_s27, 4  ;;  %s437_s28 = int_to_ptr.vmem [resolvable:$true] %s436_s28 }
  0x23   :  { %65 = vst [vmem:[#allocation2 + $0xb8] sm:$0xff] %v535_v0  ;;  %67 = vst [vmem:[#allocation2 + $0xc8] sm:$0xff] %v535_v0  ;;  %s505_s29 = scalar_lea.vmem %s437_s28, 512  ;;  %p510_p11 = scmp.lt.s32.totalorder %s437_s28, %s437_s28 }
  0x24   :  { %69 = vst [vmem:[#allocation2 + $0xd8] sm:$0xff] %v535_v0  ;;  %71 = vst [vmem:[#allocation2 + $0xe8] sm:$0xff] %v535_v0  ;;  %p506_p10 = scmp.ne.s32.totalorder %s437_s28, %s505_s29  ;;  %p511_p12 = scmp.lt.s32.totalorder %s505_s29, %s505_s29 }
  0x25   :  { %73 = vst [vmem:[#allocation2 + $0xf8] sm:$0xff] %v535_v0  ;;  %75 = vst [vmem:[#allocation2 + $0x108] sm:$0xff] %v535_v0 }
  0x26   :  { %86 = vst.msk [vmem:[#allocation2 + $0x98] sm:$0xff] %vm83_vm0, %v81_v3  ;;  %84 = vst.msk [vmem:[#allocation2 + $0x8] sm:$0xff] %vm83_vm0, %v79_v4  ;;  %207 = vrot.lane.b32.xlu1 %v79_v4, %s537_s1  ;;  %205 = vrot.lane.b32.xlu0 %v571_v2, %s537_s1  ;;  %p512_p13 = por %p511_p12, %p510_p11 }
  0x28   :  { %p513_p0 = pnand %p512_p13, %p506_p10 }
  0x2a   :  { %211 = vrot.lane.b32.xlu1 %v81_v3, %s537_s1  ;;  %209 = vrot.lane.b32.xlu0 %v569_v1, %s537_s1 }
  0x2e   :  { %188 = vrot.lane.b32.xlu1 %v79_v4, %s538_s21  ;;  %186 = vrot.lane.b32.xlu0 %v571_v2, %s538_s21 }
  0x32   :  { %192 = vrot.lane.b32.xlu1 %v81_v3, %s538_s21  ;;  %190 = vrot.lane.b32.xlu0 %v569_v1, %s538_s21 }
  0x36   :  { %169 = vrot.lane.b32.xlu1 %v79_v4, %s539_s22  ;;  %167 = vrot.lane.b32.xlu0 %v571_v2, %s539_s22 }
  0x3a   :  { %173 = vrot.lane.b32.xlu1 %v81_v3, %s539_s22  ;;  %171 = vrot.lane.b32.xlu0 %v569_v1, %s539_s22 }
  0x3e   :  { %150 = vrot.lane.b32.xlu1 %v79_v4, %s540_s23  ;;  %148 = vrot.lane.b32.xlu0 %v571_v2, %s540_s23 }
  0x42   :  { %154 = vrot.lane.b32.xlu1 %v81_v3, %s540_s23  ;;  %152 = vrot.lane.b32.xlu0 %v569_v1, %s540_s23 }
  0x46   :  { %131 = vrot.lane.b32.xlu1 %v79_v4, %s541_s24  ;;  %129 = vrot.lane.b32.xlu0 %v571_v2, %s541_s24 }
  0x4a   :  { %135 = vrot.lane.b32.xlu1 %v81_v3, %s541_s24  ;;  %133 = vrot.lane.b32.xlu0 %v569_v1, %s541_s24 }
  0x4e   :  { %112 = vrot.lane.b32.xlu1 %v79_v4, %s542_s25  ;;  %110 = vrot.lane.b32.xlu0 %v571_v2, %s542_s25 }
  0x52   :  { %116 = vrot.lane.b32.xlu1 %v81_v3, %s542_s25  ;;  %114 = vrot.lane.b32.xlu0 %v569_v1, %s542_s25 }
  0x56   :  { %93 = vrot.lane.b32.xlu1 %v79_v4, %s543_s26  ;;  %91 = vrot.lane.b32.xlu0 %v571_v2, %s543_s26 }
  0x5a   :  { %97 = vrot.lane.b32.xlu1 %v81_v3, %s543_s26  ;;  %95 = vrot.lane.b32.xlu0 %v569_v1, %s543_s26 }
  0x90   :  { %v229_v5 = vpop.permute.xlu1 %228  ;;  %v225_v6 = vpop.permute.xlu0 %224 }
  0x94   :  { %v231_v7 = vpop.permute.xlu1 %230  ;;  %v227_v8 = vpop.permute.xlu0 %226 }
  0x95   :  { %v233_v9 = vsel %vm83_vm0, %v229_v5, %v231_v7  ;;  %241 = vst.msk [vmem:[#allocation2 + $0x118] sm:$0xff] %vm83_vm0, %v231_v7  ;;  %v232_v10 = vsel %vm83_vm0, %v225_v6, %v227_v8  ;;  %239 = vst.msk [vmem:[#allocation2 + $0x88] sm:$0xff] %vm83_vm0, %v227_v8  ;;  %v244_v6 = vld [vmem:[#allocation2 + $0x8] sm:$0xff]  ;;  %v242_v7 = vld [vmem:[#allocation6] sm:$0xff] }
  0x98   :  { %v208_v11 = vpop.permute.xlu1 %207  ;;  %v206_v12 = vpop.permute.xlu0 %205 }
  0x99   :  { %221 = vst.msk [vmem:[#allocation2 + $0x78] sm:$0xff] %vm83_vm0, %v208_v11  ;;  %v214_v13 = vsel %vm213_vm1, %v206_v12, %v208_v11 }
  0x9c   :  { %v212_v14 = vpop.permute.xlu1 %211  ;;  %v210_v15 = vpop.permute.xlu0 %209  ;;  %v260_v16 = vld [vmem:[#allocation2 + $0x88] sm:$0xff]  ;;  %v356_v17 = vld [vmem:[#allocation2 + $0x118] sm:$0xff] }
  0x9d   :  { %223 = vst.msk [vmem:[#allocation2 + $0x108] sm:$0xff] %vm83_vm0, %v212_v14  ;;  %v215_v18 = vsel %vm213_vm1, %v210_v15, %v212_v14  ;;  %279 = vmatprep.subr.mxu0 %v260_v16  ;;  %371 = vmatprep.subr.mxu1 %v356_v17 }
  0x9e   :  { %280 = vmatpush1.msra.mxu0 %v232_v10  ;;  %372 = vmatpush1.msra.mxu1 %v233_v9  ;;  %v340_v9 = vld [vmem:[#allocation2 + $0x98] sm:$0xff] }
  0xa0   :  { %v189_v19 = vpop.permute.xlu1 %188  ;;  %v187_v20 = vpop.permute.xlu0 %186  ;;  %v258_v21 = vld [vmem:[#allocation2 + $0x78] sm:$0xff] }
  0xa1   :  { %202 = vst.msk [vmem:[#allocation2 + $0x68] sm:$0xff] %vm83_vm0, %v189_v19  ;;  %v195_v22 = vsel %vm194_vm2, %v187_v20, %v189_v19  ;;  %281 = vmatprep.subr.mxu0 %v258_v21 }
  0xa2   :  { %282 = vmatpush1.msra.mxu0 %v214_v13 }
  0xa4   :  { %v193_v23 = vpop.permute.xlu1 %192  ;;  %v191_v24 = vpop.permute.xlu0 %190  ;;  %v354_v25 = vld [vmem:[#allocation2 + $0x108] sm:$0xff] }
  0xa5   :  { %204 = vst.msk [vmem:[#allocation2 + $0xf8] sm:$0xff] %vm83_vm0, %v193_v23  ;;  %v196_v26 = vsel %vm194_vm2, %v191_v24, %v193_v23  ;;  %373 = vmatprep.subr.mxu1 %v354_v25 }
  0xa6   :  { %374 = vmatpush1.msra.mxu1 %v215_v18 }
  0xa8   :  { %v170_v27 = vpop.permute.xlu1 %169  ;;  %v168_v28 = vpop.permute.xlu0 %167  ;;  %v256_v29 = vld [vmem:[#allocation2 + $0x68] sm:$0xff] }
  0xa9   :  { %183 = vst.msk [vmem:[#allocation2 + $0x58] sm:$0xff] %vm83_vm0, %v170_v27  ;;  %v176_v30 = vsel %vm175_vm3, %v168_v28, %v170_v27  ;;  %283 = vmatprep.subr.mxu0 %v256_v29 }
  0xaa   :  { %284 = vmatpush1.msra.mxu0 %v195_v22 }
  0xac   :  { %v174_v31 = vpop.permute.xlu1 %173  ;;  %v172_v32 = vpop.permute.xlu0 %171  ;;  %v352_v33 = vld [vmem:[#allocation2 + $0xf8] sm:$0xff] }
  0xad   :  { %185 = vst.msk [vmem:[#allocation2 + $0xe8] sm:$0xff] %vm83_vm0, %v174_v31  ;;  %v177_v34 = vsel %vm175_vm3, %v172_v32, %v174_v31  ;;  %375 = vmatprep.subr.mxu1 %v352_v33 }
  0xae   :  { %376 = vmatpush1.msra.mxu1 %v196_v26 }
  0xb0   :  { %v151_v35 = vpop.permute.xlu1 %150  ;;  %v149_v36 = vpop.permute.xlu0 %148  ;;  %v254_v37 = vld [vmem:[#allocation2 + $0x58] sm:$0xff] }
  0xb1   :  { %164 = vst.msk [vmem:[#allocation2 + $0x48] sm:$0xff] %vm83_vm0, %v151_v35  ;;  %v157_v38 = vsel %vm156_vm4, %v149_v36, %v151_v35  ;;  %285 = vmatprep.subr.mxu0 %v254_v37 }
  0xb2   :  { %286 = vmatpush1.msra.mxu0 %v176_v30 }
  0xb4   :  { %v155_v39 = vpop.permute.xlu1 %154  ;;  %v153_v40 = vpop.permute.xlu0 %152  ;;  %v350_v41 = vld [vmem:[#allocation2 + $0xe8] sm:$0xff] }
  0xb5   :  { %166 = vst.msk [vmem:[#allocation2 + $0xd8] sm:$0xff] %vm83_vm0, %v155_v39  ;;  %v158_v42 = vsel %vm156_vm4, %v153_v40, %v155_v39  ;;  %377 = vmatprep.subr.mxu1 %v350_v41 }
  0xb6   :  { %378 = vmatpush1.msra.mxu1 %v177_v34 }
  0xb8   :  { %v132_v43 = vpop.permute.xlu1 %131  ;;  %v130_v44 = vpop.permute.xlu0 %129  ;;  %v252_v45 = vld [vmem:[#allocation2 + $0x48] sm:$0xff] }
  0xb9   :  { %145 = vst.msk [vmem:[#allocation2 + $0x38] sm:$0xff] %vm83_vm0, %v132_v43  ;;  %v138_v46 = vsel %vm137_vm5, %v130_v44, %v132_v43  ;;  %287 = vmatprep.subr.mxu0 %v252_v45 }
  0xba   :  { %288 = vmatpush1.msra.mxu0 %v157_v38 }
  0xbc   :  { %v136_v47 = vpop.permute.xlu1 %135  ;;  %v134_v48 = vpop.permute.xlu0 %133  ;;  %v348_v49 = vld [vmem:[#allocation2 + $0xd8] sm:$0xff] }
  0xbd   :  { %147 = vst.msk [vmem:[#allocation2 + $0xc8] sm:$0xff] %vm83_vm0, %v136_v47  ;;  %v139_v50 = vsel %vm137_vm5, %v134_v48, %v136_v47  ;;  %379 = vmatprep.subr.mxu1 %v348_v49 }
  0xbe   :  { %380 = vmatpush1.msra.mxu1 %v158_v42 }
  0xc0   :  { %v113_v51 = vpop.permute.xlu1 %112  ;;  %v111_v52 = vpop.permute.xlu0 %110  ;;  %v250_v53 = vld [vmem:[#allocation2 + $0x38] sm:$0xff] }
  0xc1   :  { %126 = vst.msk [vmem:[#allocation2 + $0x28] sm:$0xff] %vm83_vm0, %v113_v51  ;;  %v119_v54 = vsel %vm118_vm6, %v111_v52, %v113_v51  ;;  %289 = vmatprep.subr.mxu0 %v250_v53 }
  0xc2   :  { %290 = vmatpush1.msra.mxu0 %v138_v46 }
  0xc4   :  { %v117_v55 = vpop.permute.xlu1 %116  ;;  %v115_v56 = vpop.permute.xlu0 %114  ;;  %v346_v57 = vld [vmem:[#allocation2 + $0xc8] sm:$0xff] }
  0xc5   :  { %128 = vst.msk [vmem:[#allocation2 + $0xb8] sm:$0xff] %vm83_vm0, %v117_v55  ;;  %v120_v58 = vsel %vm118_vm6, %v115_v56, %v117_v55  ;;  %381 = vmatprep.subr.mxu1 %v346_v57 }
  0xc6   :  { %382 = vmatpush1.msra.mxu1 %v139_v50 }
  0xc8   :  { %v94_v59 = vpop.permute.xlu1 %93  ;;  %v92_v60 = vpop.permute.xlu0 %91  ;;  %v248_v61 = vld [vmem:[#allocation2 + $0x28] sm:$0xff] }
  0xc9   :  { %107 = vst.msk [vmem:[#allocation2 + $0x18] sm:$0xff] %vm83_vm0, %v94_v59  ;;  %v100_v62 = vsel %vm99_vm7, %v92_v60, %v94_v59  ;;  %291 = vmatprep.subr.mxu0 %v248_v61 }
  0xca   :  { %292 = vmatpush1.msra.mxu0 %v119_v54 }
  0xcc   :  { %v98_v63 = vpop.permute.xlu1 %97  ;;  %v96_v0 = vpop.permute.xlu0 %95  ;;  %v344_v3 = vld [vmem:[#allocation2 + $0xb8] sm:$0xff] }
  0xcd   :  { %109 = vst.msk [vmem:[#allocation2 + $0xa8] sm:$0xff] %vm83_vm0, %v98_v63  ;;  %v101_v4 = vsel %vm99_vm7, %v96_v0, %v98_v63  ;;  %383 = vmatprep.subr.mxu1 %v344_v3 }
  0xce   :  { %384 = vmatpush1.msra.mxu1 %v120_v58 }
  0xd0   :  { %v246_v5 = vld [vmem:[#allocation2 + $0x18] sm:$0xff] }
  0xd1   :  { %293 = vmatprep.subr.mxu0 %v246_v5 }
  0xd2   :  { %294 = vmatpush1.msra.mxu0 %v100_v62 }
  0xd3   :  { %295 = vmatprep.subr.mxu0 %v244_v6 }
  0xd4   :  { %v342_v8 = vld [vmem:[#allocation2 + $0xa8] sm:$0xff]  ;;  %296 = vmatpush1.msra.mxu0 %v571_v2 }
  0xd5   :  { %385 = vmatprep.subr.mxu1 %v342_v8  ;;  %449 = vmatmul.mubr.msk.f32.vlgmr.msra.gmra.mxu0 %vm261_vm8, %v242_v7 }
  0xd6   :  { %386 = vmatpush1.msra.mxu1 %v101_v4 }
  0xd7   :  { %387 = vmatprep.subr.mxu1 %v340_v9 }
  0xd8   :  { %388 = vmatpush1.msra.mxu1 %v569_v1 }
  0xd9   :  { %450 = vmatmul.mubr.msk.f32.vlgmr.msra.gmra.mxu1 %vm261_vm8, %v242_v7 }
 0x195   :  { %v331_v10 = vpop.f32.mrf.mxu0 }
 0x196   :  { %336 = vst [vmem:[#allocation8] sm:$0xff] %v331_v10 }
 0x197   :  { %v333_v11 = vpop.f32.mrf.mxu0 }
 0x198   :  { %337 = vst [vmem:[#allocation8 + $0x8] sm:$0xff] %v333_v11 }
 0x199   :  { %v423_v12 = vpop.f32.mrf.mxu1 }
 0x19a   :  { %429 = vst [vmem:[#allocation8 + $0x10] sm:$0xff] %v423_v12 }
 0x19b   :  { %v425_v13 = vpop.f32.mrf.mxu1 }
 0x19c   :  { %430 = vst [vmem:[#allocation8 + $0x18] sm:$0xff] %v425_v13 }
 0x19d   :  { %516 = shalt.err (!%p513_p0)
}
 0x19e   :  { %442 = dma.vmem_to_hbm [thread:$0]  %s437_s28, 512, %s619_s2, [#allocation5], %s532_s12, %s532_s12, %s533_s13  }
 0x19f   :  { %529 = dma.done.wait [#allocation5], 512  }
 0x1a0   :  { %530 = vsyncadd [#allocation5], 4294966784 }
 0x1a1   :  { %446 = vsyncpa [#allocation4], 1 }
 0x1a2   :  { %447 = vsyncpa [#allocation7], 1 }
 0x1a3   :  { %448 = vsyncpa [#allocation5], 1 }

</bundles_post_ra>
